<compile_context>
chip_gen: v5e
topology: v5e:2x2
jax: 0.10.0
libtpu: 0.0.40
codegen_flags: <defaults>
</compile_context>

<pallas_src>
import jax
import jax.numpy as jnp
from jax.experimental import pallas as pl
from jax.experimental.pallas import tpu as pltpu


def _round_up(n, m):
    return ((n + m - 1) // m) * m


def _make_mlp_kernel(dims):
    """dims = (in0, out0(=in1), ..., 1); len(dims) = num_linear + 1."""
    num_linear = len(dims) - 1

    def kernel(x_ref, w_ref, b_ref, out_ref):
        # x_ref:   (in_dim, T)          f32   (batch on lanes)
        # w_ref:   (L, P_out, P_in)     f32, zero padded, [out, in] per layer
        # b_ref:   (L, P_out, 1)        f32, zero padded
        # out_ref: (1, T)               f32   (lane-dense)
        h = x_ref[...]                                    # [in_dim, T]
        for i in range(num_linear):
            d_in, d_out = dims[i], dims[i + 1]
            w = w_ref[i, :d_out, :d_in]                   # [d_out, d_in] (static slice)
            b = b_ref[i, :d_out, :]                       # [d_out, 1]
            h = jnp.dot(w, h, preferred_element_type=jnp.float32) + b
            if i < num_linear - 1:
                h = jnp.maximum(h, 0.0)                   # ReLU on the VPU
        # Last layer has d_out == 1  ->  h is [1, T], already lane-major.
        out_ref[...] = h.astype(out_ref.dtype)

    return kernel


def pack_potential_params(weights, biases):
    """Pack per-layer params once (call at init, NOT per forward).

    weights: list of [in_i, out_i] f32 (transposed vs torch.nn.Linear)
    biases:  list of [out_i]       f32
    Returns (w_packed [L, P_out, P_in], b_packed [L, P_out, 1], dims tuple).
    """
    num_linear = len(weights)
    dims = [int(weights[0].shape[0])] + [int(w.shape[1]) for w in weights]
    for i in range(num_linear):
        assert int(weights[i].shape[0]) == dims[i], "layer in/out dims must chain"
        assert int(biases[i].shape[0]) == dims[i + 1]
    # The kernel's final-layer path assumes a single output feature,
    # matching the torch module's last Linear(hidden, 1).
    assert dims[-1] == 1, "Potential's final Linear must have out_features == 1"

    p_out = _round_up(max(dims[1:]), 8)           # sublane dim of the slab
    p_in = _round_up(max(dims[:-1]), 128)         # lane dim: 128-aligned DMA rows
    w_packed = jnp.zeros((num_linear, p_out, p_in), jnp.float32)
    b_packed = jnp.zeros((num_linear, p_out, 1), jnp.float32)
    for i, (w, b) in enumerate(zip(weights, biases)):
        # store as [out, in] so the kernel computes W @ h (batch on lanes)
        w_packed = w_packed.at[i, : w.shape[1], : w.shape[0]].set(w.T)
        b_packed = b_packed.at[i, : b.shape[0], 0].set(b)
    return w_packed, b_packed, tuple(dims)


def _choose_tile(B, batch_tile, max_tile=2048):
    if batch_tile is not None:
        return max(128, _round_up(int(batch_tile), 128))
    n128 = _round_up(B, 128) // 128
    if n128 <= 1:
        return 128
    # Aim for an even 2-step grid (both v7x TCs get work); only ~0.35us of
    # extra per-step overhead on single-TC v5e/v6e.  Cap the tile so the
    # double-buffered x/out blocks stay tiny in VMEM.
    return min(((n128 + 1) // 2) * 128, max_tile)


def potential_forward(x, w_packed, b_packed, dims, *, batch_tile=None):
    """Forward pass of the Potential MLP via a single Pallas TPU kernel.

    x:        [B, input_dim] float32
    w_packed, b_packed, dims: output of pack_potential_params (packed once)
    returns:  [B, 1] float32
    """
    B, in_dim = x.shape
    assert in_dim == dims[0], "x feature dim must match the first layer"
    num_linear = len(dims) - 1

    tile = _choose_tile(B, batch_tile)
    b_pad = _round_up(B, tile)
    num_tiles = b_pad // tile

    if b_pad != B:
        x = jnp.pad(x, ((0, b_pad - B), (0, 0)))
    x_t = x.T                                           # [in_dim, b_pad], batch on lanes

    kernel = _make_mlp_kernel(dims)

    grid_spec = pltpu.PrefetchScalarGridSpec(
        num_scalar_prefetch=0,
        grid=(num_tiles,),
        in_specs=[
            pl.BlockSpec((in_dim, tile), lambda i: (0, i)),
            pl.BlockSpec(tuple(w_packed.shape), lambda i: (0, 0, 0)),
            pl.BlockSpec(tuple(b_packed.shape), lambda i: (0, 0, 0)),
        ],
        out_specs=pl.BlockSpec((1, tile), lambda i: (0, i)),
    )

    flops = 2 * b_pad * sum(dims[i] * dims[i + 1] for i in range(num_linear))
    bytes_accessed = (
        b_pad * in_dim * 4 + b_pad * 4 + (w_packed.size + b_packed.size) * 4
    )
    cost = pl.CostEstimate(
        flops=flops, transcendentals=0, bytes_accessed=bytes_accessed
    )

    # Explicit VMEM budget (double-buffered x/out blocks + param slabs +
    # activation headroom), with 2x margin; safe on v7x's smaller VMEM.
    vmem_est = (
        2 * tile * in_dim * 4
        + 2 * tile * 4
        + (w_packed.size + b_packed.size) * 4
        + 4 * tile * _round_up(max(dims), 8) * 4
    )
    vmem_limit = int(min(32 * 1024 * 1024, max(2 * 1024 * 1024, 2 * vmem_est)))

    out = pl.pallas_call(
        kernel,
        out_shape=jax.ShapeDtypeStruct((1, b_pad), jnp.float32),
        grid_spec=grid_spec,
        compiler_params=pltpu.CompilerParams(
            dimension_semantics=("parallel",),
            vmem_limit_bytes=vmem_limit,
        ),
        cost_estimate=cost,
    )(x_t, w_packed, b_packed)

    # [1, b_pad] -> [B, 1]  (pure reshape: batch order preserved)
    return out.reshape(b_pad, 1)[:B]


def init_potential_params(key, input_dim, hidden_dim, num_layers):
    """Deterministic init matching torch.nn.Linear shapes (stored transposed).

    Layer dims:  input_dim -> hidden -> ... -> hidden -> 1
    """
    dims = [input_dim] + [hidden_dim] * (num_layers - 1) + [1]
    weights, biases = [], []
    for i in range(num_layers):
        fan_in, fan_out = dims[i], dims[i + 1]
        key, kw, kb = jax.random.split(key, 3)
        bound = 1.0 / jnp.sqrt(float(fan_in))
        w = jax.random.uniform(kw, (fan_in, fan_out), jnp.float32, -bound, bound)
        b = jax.random.uniform(kb, (fan_out,), jnp.float32, -bound, bound)
        weights.append(w)
        biases.append(b)
    return weights, biases


def potential_reference(x, weights, biases):
    """Pure-JAX reference of the same forward pass (Linear+ReLU ... Linear)."""
    h = x
    n = len(weights)
    for i, (w, b) in enumerate(zip(weights, biases)):
        h = h @ w + b
        if i < n - 1:
            h = jnp.maximum(h, 0.0)
    return h


if __name__ == "__main__":
    # Small shapes implied by the module: x is [batch, input_dim].
    # batch=512 -> tile=256, a 2-step "parallel" grid (even split for v7x's
    # two TensorCores; negligible overhead on single-TC v5e/v6e).
    batch, input_dim, hidden_dim, num_layers = 512, 8, 32, 3

    key = jax.random.PRNGKey(0)
    key, kx = jax.random.split(key)
    x = jax.random.normal(kx, (batch, input_dim), jnp.float32)

    weights, biases = init_potential_params(key, input_dim, hidden_dim, num_layers)
    # Pack once at init (kept off the per-call hot path).
    w_packed, b_packed, dims = pack_potential_params(weights, biases)

    out = potential_forward(x, w_packed, b_packed, dims)
    out = jax.block_until_ready(out)

    ref = potential_reference(x, weights, biases)
    assert out.shape == (batch, 1)
    assert jnp.allclose(out, ref, atol=1e-5, rtol=1e-5), float(
        jnp.max(jnp.abs(out - ref))
    )

    print("KERNEL_OK")
</pallas_src>

<mosaic_0001>
module attributes {stable_mosaic.version = 11 : i64} {
  func.func @kernel(%arg0: i32, %arg1: memref<8x256xf32, #tpu.memory_space<vmem>>, %arg2: memref<3x32x128xf32, #tpu.memory_space<vmem>>, %arg3: memref<3x32x1xf32, #tpu.memory_space<vmem>>, %arg4: memref<1x256xf32, #tpu.memory_space<vmem>>) attributes {dimension_semantics = [#tpu.dimension_semantics<parallel>], iteration_bounds = array<i64: 2>, scalar_prefetch = 0 : i64, scratch_operands = 0 : i64, tpu.core_type = #tpu.core_type<tc>, window_params = [{transform_indices = @transform_0, window_bounds = array<i64: 8, 256>}, {pipeline_mode = #tpu.pipeline_mode<synchronous>, transform_indices = @transform_1, window_bounds = array<i64: 3, 32, 128>}, {pipeline_mode = #tpu.pipeline_mode<synchronous>, transform_indices = @transform_2, window_bounds = array<i64: 3, 32, 1>}, {transform_indices = @transform_3, window_bounds = array<i64: 1, 256>}]} {
    %c0 = arith.constant 0 : index
    %c0_0 = arith.constant 0 : index
    %0 = vector.load %arg1[%c0, %c0_0] : memref<8x256xf32, #tpu.memory_space<vmem>>, vector<8x256xf32>
    %c0_1 = arith.constant 0 : index
    %c0_2 = arith.constant 0 : index
    %c0_3 = arith.constant 0 : index
    %1 = vector.load %arg2[%c0_1, %c0_2, %c0_3] : memref<3x32x128xf32, #tpu.memory_space<vmem>>, vector<1x32x8xf32>
    %2 = vector.shape_cast %1 : vector<1x32x8xf32> to vector<32x8xf32>
    %c0_4 = arith.constant 0 : index
    %c0_5 = arith.constant 0 : index
    %c0_6 = arith.constant 0 : index
    %3 = vector.load %arg3[%c0_4, %c0_5, %c0_6] : memref<3x32x1xf32, #tpu.memory_space<vmem>>, vector<1x32x1xf32>
    %4 = vector.shape_cast %3 : vector<1x32x1xf32> to vector<32x1xf32>
    %cst = arith.constant dense<0.000000e+00> : vector<32x256xf32>
    %5 = tpu.matmul %2, %0, %cst {dimension_numbers = #tpu.dot_dimension_numbers<[1], [0], [0], [1], [0, 0, 1, 1], [], []>} : vector<32x8xf32>, vector<8x256xf32>, vector<32x256xf32> -> vector<32x256xf32>
    %6 = vector.broadcast %4 : vector<32x1xf32> to vector<32x256xf32>
    %7 = arith.addf %5, %6 : vector<32x256xf32>
    %cst_7 = arith.constant 0.000000e+00 : f32
    %8 = vector.broadcast %cst_7 : f32 to vector<32x256xf32>
    %9 = arith.maximumf %7, %8 : vector<32x256xf32>
    %c1 = arith.constant 1 : index
    %c0_8 = arith.constant 0 : index
    %c0_9 = arith.constant 0 : index
    %10 = vector.load %arg2[%c1, %c0_8, %c0_9] : memref<3x32x128xf32, #tpu.memory_space<vmem>>, vector<1x32x32xf32>
    %11 = vector.shape_cast %10 : vector<1x32x32xf32> to vector<32x32xf32>
    %c1_10 = arith.constant 1 : index
    %c0_11 = arith.constant 0 : index
    %c0_12 = arith.constant 0 : index
    %12 = vector.load %arg3[%c1_10, %c0_11, %c0_12] : memref<3x32x1xf32, #tpu.memory_space<vmem>>, vector<1x32x1xf32>
    %13 = vector.shape_cast %12 : vector<1x32x1xf32> to vector<32x1xf32>
    %cst_13 = arith.constant dense<0.000000e+00> : vector<32x256xf32>
    %14 = tpu.matmul %11, %9, %cst_13 {dimension_numbers = #tpu.dot_dimension_numbers<[1], [0], [0], [1], [0, 0, 1, 1], [], []>} : vector<32x32xf32>, vector<32x256xf32>, vector<32x256xf32> -> vector<32x256xf32>
    %15 = vector.broadcast %13 : vector<32x1xf32> to vector<32x256xf32>
    %16 = arith.addf %14, %15 : vector<32x256xf32>
    %cst_14 = arith.constant 0.000000e+00 : f32
    %17 = vector.broadcast %cst_14 : f32 to vector<32x256xf32>
    %18 = arith.maximumf %16, %17 : vector<32x256xf32>
    %c2 = arith.constant 2 : index
    %c0_15 = arith.constant 0 : index
    %c0_16 = arith.constant 0 : index
    %19 = vector.load %arg2[%c2, %c0_15, %c0_16] : memref<3x32x128xf32, #tpu.memory_space<vmem>>, vector<1x1x32xf32>
    %20 = vector.shape_cast %19 : vector<1x1x32xf32> to vector<1x32xf32>
    %c2_17 = arith.constant 2 : index
    %c0_18 = arith.constant 0 : index
    %c0_19 = arith.constant 0 : index
    %21 = vector.load %arg3[%c2_17, %c0_18, %c0_19] : memref<3x32x1xf32, #tpu.memory_space<vmem>>, vector<1x1x1xf32>
    %22 = vector.shape_cast %21 : vector<1x1x1xf32> to vector<1x1xf32>
    %cst_20 = arith.constant dense<0.000000e+00> : vector<1x256xf32>
    %23 = tpu.matmul %20, %18, %cst_20 {dimension_numbers = #tpu.dot_dimension_numbers<[1], [0], [0], [1], [0, 0, 1, 1], [], []>} : vector<1x32xf32>, vector<32x256xf32>, vector<1x256xf32> -> vector<1x256xf32>
    %24 = vector.broadcast %22 : vector<1x1xf32> to vector<1x256xf32>
    %25 = arith.addf %23, %24 : vector<1x256xf32>
    %c0_21 = arith.constant 0 : index
    %c0_22 = arith.constant 0 : index
    %26 = vector.load %arg4[%c0_21, %c0_22] : memref<1x256xf32, #tpu.memory_space<vmem>>, vector<1x256xf32>
    tpu.vector_store %arg4[%c0_21, %c0_22], %25 {strides = array<i32>} : memref<1x256xf32, #tpu.memory_space<vmem>>, vector<1x256xf32>,
    return
  }
  func.func @transform_0(%arg0: i32) -> (i32, i32) {
    %c0_i32 = arith.constant 0 : i32
    %c0_i32_0 = arith.constant 0 : i32
    return %c0_i32, %arg0 : i32, i32
  }
  func.func @transform_1(%arg0: i32) -> (i32, i32, i32) {
    %c0_i32 = arith.constant 0 : i32
    %c0_i32_0 = arith.constant 0 : i32
    %c0_i32_1 = arith.constant 0 : i32
    %c0_i32_2 = arith.constant 0 : i32
    return %c0_i32, %c0_i32_0, %c0_i32_1 : i32, i32, i32
  }
  func.func @transform_2(%arg0: i32) -> (i32, i32, i32) {
    %c0_i32 = arith.constant 0 : i32
    %c0_i32_0 = arith.constant 0 : i32
    %c0_i32_1 = arith.constant 0 : i32
    %c0_i32_2 = arith.constant 0 : i32
    return %c0_i32, %c0_i32_0, %c0_i32_1 : i32, i32, i32
  }
  func.func @transform_3(%arg0: i32) -> (i32, i32) {
    %c0_i32 = arith.constant 0 : i32
    %c0_i32_0 = arith.constant 0 : i32
    return %c0_i32, %arg0 : i32, i32
  }
}

</mosaic_0001>

<bundles_post_ra>
// kernel: tpu_custom_call.1
= control target key start
LH: loop header
LB: loop body
LE: loop exit
PB: predicated region body
PF: predicated region fallthrough
CT: control target
= control target key end

     0   :  { %8 = vsyncpa [#allocation3], 0  ;;  %s969_s0 = inlined_call_operand.hbm [shape: f32[8,512], index: 0, kind: input, shape index: {}]   ;;  %s970_s1 = inlined_call_operand.vmem [shape: f32[3,32,128], index: 1, kind: input, shape index: {}]   ;;  %s971_s2 = inlined_call_operand.vmem [shape: f32[3,32,1], index: 2, kind: input, shape index: {}]   ;;  %s972_s3 = inlined_call_operand.hbm [shape: f32[1,512], index: 3, kind: output, shape index: {}]  }
   0x1   :  { %10 = vsyncpa [#allocation3 + $0x1], 0 }
   0x2   :  { %11 = vsyncpa [#allocation4], 0 }
   0x3   :  { %13 = vsyncpa [#allocation4 + $0x1], 0  ;;  %s769_s12 = smov 0   ;;  %s771_s13 = smov 0  }
   0x4   :  { %s773_s14 = smov 0   ;;  %s775_s15 = smov 0  }
   0x5 LB: > { %s790_s16 = sadd.s32 4294967295, %s746_s15   ;;  %s558_s17 = sadd.s32 4294967294, %s746_s15   ;;  %s746_s15 = sphi %s775_s15, %s982_s15   ;;  %s742_s14 = sphi %s773_s14, %s981_s14   ;;  %s738_s13 = sphi %s771_s13, %s980_s13   ;;  %s734_s12 = sphi %s769_s12, %s979_s12  }
   0x6   : > { %s794_s18 = sadd.s32 1, %s746_s15   ;;  %s26_s19 = sadd.s32 1, %s742_s14 }
   0x7   : > { %s23_s20 = ssub.s32 %s746_s15, %s794_s18  ;;  %p33_p0 = scmp.ne.s32.totalorder %s742_s14, %s738_s13 }
   0x8   : > { %p24_p1 = scmp.eq.s32.totalorder %s23_s20, 0  ;;  %p34_p2 = scmp.eq.s32.totalorder %s746_s15, 0 }
   0x9   : > { %p39_p3 = scmp.ne.s32.totalorder %s738_s13, %s734_s12  ;;  %p40_p4 = scmp.eq.s32.totalorder %s790_s16, 0 }
   0xa   : > { %s806_s21 = scalar_select %p24_p1, %s742_s14, %s26_s19  }
   0xb   : > { %p808_p5 = por %p34_p2, %p33_p0  ;;  %p812_p6 = por %p40_p4, %p39_p3 }
   0xc   : > { %p105_p7 = scmp.eq.s32.totalorder %s790_s16, 1  ;;  %p111_p8 = scmp.eq.s32.totalorder %s558_s17, 1 }
   0xd   : > { %p612_p10 = scmp.lt.s32.totalorder %s746_s15, 2  ;;  %s137_s26 = sand.u32 1, %s742_s14  }
   0xe   : > { %p819_p11 = por %p105_p7, %p33_p0  ;;  %p823_p12 = por %p111_p8, %p39_p3 }
   0xf   : > { %s599_s27 = sshll.u32 %s746_s15, 4  ;;  %s561_s28 = sshll.u32 %s137_s26, 4 }
  0x10   : > { %s146_s4 = scalar_lea.hbm %s969_s0, %s599_s27  ;;  %s141_s6 = scalar_lea.vmem [#allocation2], %s561_s28 }
  0x11   : > { %s148_s5 = sshll.u32 %s146_s4, 4  ;;  %s150_s7 = sshll.u32 %s141_s6, 4  ;;  %s149_s5 = int_to_ptr.hbm [resolvable:$true] %s148_s5  ;;  %s151_s7 = int_to_ptr.vmem [resolvable:$true] %s150_s7 }
  0x12   : > { %p834_p13 = pnand %p612_p10, %p808_p5  ;;  %p564_p0 = scmp.ge.s32.totalorder %s746_s15, 1 }
  0x13   : > { %p155_p1 = scmp.lt.s32.totalorder %s746_s15, 3  ;;  %s138_s9 = scalar_lea.sflag [#allocation3], %s137_s26 }
  0x14   : > { %s650_s10 = sshra.s32 %s149_s5, 4  ;;  %p654_p3 = pneg %p834_p13  ;;  %s651_s10 = int_to_ptr.hbm [resolvable:$true] %s650_s10 }
  0x15   : > { %s652_s11 = scalar_lea.hbm %s651_s10, 16  ;;  %s657_s20 = scalar_lea.hbm %s969_s0, 32 }
  0x16   : > { %p653_p2 = scmp.ne.s32.totalorder %s651_s10, %s652_s11  ;;  %p658_p5 = scmp.lt.s32.totalorder %s651_s10, %s969_s0 }
  0x17   : > { %p659_p8 = scmp.lt.s32.totalorder %s657_s20, %s652_s11 }
  0x18   : > { %p655_p4 = pnand %p654_p3, %p653_p2 }
  0x19   : > { %p660_p10 = por %p659_p8, %p658_p5 }
  0x1a   : > { %p656_p7 = pneg %p655_p4 }
  0x1c   : > { %p661_p9 = pnand %p660_p10, %p656_p7 }
  0x1e   : > { %664 = shalt.err (!%p661_p9)
}
  0x1f   : > { %607 = dma.hbm_to_vmem [thread:$0]  (!%p834_p13), %s149_s5, 256, %s151_s7, %s138_s9  }
  0x20   : > { %p156_p2 = pnand %p564_p0, %p155_p1 }
  0x21   : > { %s855_s26 = sand.u32 (!%p156_p2), 1, %s738_s13  }
  0x22   : > { %159 = sbr.rel (%p156_p2) target bundleno = 506 (0x1fa), region = 32  ;;  %s565_s28 = sshll.u32 (!%p156_p2), %s855_s26, 4 }
  0x23   : > { %s162_s29 = scalar_lea.sflag (!%p156_p2), [#allocation3], %s855_s26  ;;  %s165_s30 = scalar_lea.vmem (!%p156_p2), [#allocation2], %s565_s28 }
  0x27   : > { %725 = dma.done.wait (%p812_p6), %s162_s29, 256  }
  0x28   : > { %727 = vsyncadd (%p812_p6), %s162_s29, 4294967040  ;;  %v748_v0 = vmov 0   ;;  %vm221_vm0 = vcmask 64512   ;;  %v191_v1 = vld [vmem:[%s165_s30] sm:$0xff]  ;;  %v192_v2 = vld [vmem:[%s165_s30 + $0x8] sm:$0xff]  ;;  %vm330_vm1 = vcmask 261120  }
  0x29   : > { %648 = vset.pattern.permute.xlu1 %v748_v0  ;;  %647 = vset.pattern.permute.xlu0 %v748_v0  ;;  %v193_v3 = vld [vmem:[%s970_s1] sm:$0xff]  ;;  %v198_v4 = vld [vmem:[%s971_s2 + $0x8] sm:$0xff]  ;;  %v200_v5 = vld [vmem:[%s971_s2 + $0x18] sm:$0xff]  ;;  %s566_s6 = sshll.u32 %s855_s26, 1  ;;  %s596_s7 = sshll.u32 %s790_s16, 1  ;;  %vm464_vm2 = vcmask 1040384  }
  0x2a   : > { %649 = vset.pattern.permute.xlu2 %v748_v0  ;;  %249 = vmatpush.msra.mxu0 %v191_v1  ;;  %v194_v6 = vld [vmem:[%s970_s1 + $0x8] sm:$0xff]  ;;  %v197_v7 = vld [vmem:[%s971_s2] sm:$0xff]  ;;  %v199_v8 = vld [vmem:[%s971_s2 + $0x10] sm:$0xff]  ;;  %s483_s9 = scalar_lea.hbm %s972_s3, %s596_s7  ;;  %s188_s10 = scalar_lea.vmem [#allocation5], %s566_s6 }
  0x2b   : > { %278 = vmatpush.msra.mxu1 %v192_v2  ;;  %567 = vmatmul.msk.f32.vlgmr.msra.gmra.mxu0 %vm221_vm0, %v193_v3  ;;  %v195_v9 = vld [vmem:[%s970_s1 + $0x10] sm:$0xff]  ;;  %v580_v10 = vld [vmem:[%s971_s2 + $0x28] sm:$0xff]  ;;  %v579_v11 = vld [vmem:[%s971_s2 + $0x20] sm:$0xff]  ;;  %s485_s11 = sshll.u32 %s188_s10, 4  ;;  %s487_s17 = sshll.u32 %s483_s9, 4  ;;  %s486_s11 = int_to_ptr.vmem [resolvable:$true] %s485_s11  ;;  %s488_s17 = int_to_ptr.hbm [resolvable:$true] %s487_s17 }
  0x2c   : > { %571 = vmatmul.msk.f32.vlgmr.msra.gmra.mxu1 %vm221_vm0, %v193_v3  ;;  %208 = vperm.xlu1 %648, %v198_v4   ;;  %v196_v12 = vld [vmem:[%s970_s1 + $0x18] sm:$0xff]  ;;  %v575_v42 = vld [vmem:[%s970_s1 + $0x20] sm:$0xff]  ;;  %v581_v43 = vld [vmem:[%s971_s2 + $0x30] sm:$0xff]  ;;  %s473_s16 = scalar_lea.sflag [#allocation4], %s855_s26  ;;  %s694_s19 = sshra.s32 %s488_s17, 4  ;;  %s695_s19 = int_to_ptr.hbm [resolvable:$true] %s694_s19 }
  0x2d   : > { %218 = vperm.xlu0 %647, %v200_v5   ;;  %v582_v33 = vld [vmem:[%s971_s2 + $0x38] sm:$0xff]  ;;  %v576_v44 = vld [vmem:[%s970_s1 + $0x28] sm:$0xff]  ;;  %v592_v45 = vld [vmem:[%s971_s2 + $0x40] sm:$0x1]  ;;  %s696_s20 = scalar_lea.hbm %s695_s19, 2  ;;  %s700_s28 = scalar_lea.hbm %s972_s3, 4 }
  0x2e   : > { %327 = vperm.xlu2 %649, %v582_v33   ;;  %v577_v46 = vld [vmem:[%s970_s1 + $0x30] sm:$0xff]  ;;  %v578_v47 = vld [vmem:[%s970_s1 + $0x38] sm:$0xff]  ;;  %p697_p6 = scmp.ne.s32.totalorder %s695_s19, %s696_s20  ;;  %p701_p0 = scmp.lt.s32.totalorder %s695_s19, %s972_s3 }
  0x2f   : > { %p702_p1 = scmp.lt.s32.totalorder %s700_s28, %s696_s20 }
  0x30   : > { %p698_p9 = pnand %p697_p6, %p819_p11 }
  0x31   : > { %p703_p3 = por %p702_p1, %p701_p0 }
  0x32   : > { %p699_p13 = pneg %p698_p9 }
  0x33   : > { %568 = vmatmul.msk.f32.gmra.mxu0 %vm221_vm0, %v194_v6 }
  0x34   : > { %572 = vmatmul.msk.f32.gmra.mxu1 %vm221_vm0, %v194_v6  ;;  %203 = vperm.xlu1 %648, %v197_v7   ;;  %p704_p4 = pnand %p703_p3, %p699_p13 }
  0x35   : > { %213 = vperm.xlu0 %647, %v199_v8  }
  0x36   : > { %322 = vperm.xlu2 %649, %v581_v43  }
  0x3b   : > { %569 = vmatmul.msk.f32.gmra.mxu0 %vm221_vm0, %v195_v9 }
  0x3c   : > { %573 = vmatmul.msk.f32.gmra.mxu1 %vm221_vm0, %v195_v9  ;;  %312 = vperm.xlu1 %648, %v579_v11  }
  0x3d   : > { %317 = vperm.xlu0 %647, %v580_v10  }
  0x3e   : > { %415 = vperm.xlu2 %649, %v592_v45  }
  0x43   : > { %570 = vmatmul.msk.f32.gmra.mxu0 %vm221_vm0, %v196_v12 }
  0x44   : > { %574 = vmatmul.msk.f32.gmra.mxu1 %vm221_vm0, %v196_v12  ;;  %v591_v12 = vld [vmem:[%s970_s1 + $0x40] sm:$0x1] }
  0x88   : > { %v328_v52 = vpop.permute.xlu2 %327 }
  0x90   : > { %v323_v55 = vpop.permute.xlu2 %322 }
  0x9e   : > { %v209_v18 = vpop.permute.xlu1 %208 }
  0x9f   : > { %v219_v17 = vpop.permute.xlu0 %218 }
  0xa6   : > { %v204_v28 = vpop.permute.xlu1 %203 }
  0xa7   : > { %v214_v21 = vpop.permute.xlu0 %213 }
  0xa8   : > { %v251_v13 = vpop.f32.mrf.mxu0 }
  0xa9   : > { %v280_v14 = vpop.f32.mrf.mxu1  ;;  %v252_v34 = vadd.f32 %v251_v13, %v204_v28  ;;  %v416_v13 = vpop.permute.xlu2 %415 }
  0xaa   : > { %v281_v35 = vadd.f32 %v280_v14, %v204_v28  ;;  %v467_v14 = vlaneseq }
  0xab   : > { %v292_v40 = vmax.f32 %v252_v34, 0.0 }
  0xac   : > { %v293_v41 = vmax.f32 %v281_v35, 0.0  ;;  %vm469_vm3 = vcmp.lt.s32.totalorder %v467_v14, 256 }
  0xae   : > { %v313_v3 = vpop.permute.xlu1 %312 }
  0xaf   : > { %v318_v62 = vpop.permute.xlu0 %317 }
  0xb0   : > { %v254_v15 = vpop.f32.mrf.mxu0 }
  0xb1   : > { %v283_v16 = vpop.f32.mrf.mxu1  ;;  %v255_v29 = vadd.f32 %v254_v15, %v209_v18 }
  0xb2   : > { %v284_v30 = vadd.f32 %v283_v16, %v209_v18 }
  0xb3   : > { %v294_v38 = vmax.f32 %v255_v29, 0.0 }
  0xb4   : > { %v295_v39 = vmax.f32 %v284_v30, 0.0 }
  0xb8   : > { %v257_v19 = vpop.f32.mrf.mxu0 }
  0xb9   : > { %v286_v20 = vpop.f32.mrf.mxu1  ;;  %v258_v24 = vadd.f32 %v257_v19, %v214_v21 }
  0xba   : > { %v287_v25 = vadd.f32 %v286_v20, %v214_v21 }
  0xbb   : > { %v296_v36 = vmax.f32 %v258_v24, 0.0 }
  0xbc   : > { %v297_v37 = vmax.f32 %v287_v25, 0.0 }
  0xc0   : > { %v260_v22 = vpop.f32.mrf.mxu0 }
  0xc1   : > { %v289_v23 = vpop.f32.mrf.mxu1  ;;  %v261_v26 = vadd.f32 %v260_v22, %v219_v17 }
  0xc2   : > { %v290_v27 = vadd.f32 %v289_v23, %v219_v17 }
  0xc3   : > { %v298_v31 = vmax.f32 %v261_v26, 0.0 }
  0xc4   : > { %v299_v32 = vmax.f32 %v290_v27, 0.0 }
  0xc5   : > { %355 = vmatpush.msra.mxu2 %v298_v31 }
  0xc6   : > { %384 = vmatpush.msra.mxu3 %v299_v32 }
  0xc7   : > { %356 = vmatpush.msra.mxu2 %v296_v36 }
  0xc8   : > { %385 = vmatpush.msra.mxu3 %v297_v37 }
  0xc9   : > { %357 = vmatpush.msra.mxu2 %v294_v38 }
  0xca   : > { %386 = vmatpush.msra.mxu3 %v295_v39 }
  0xcb   : > { %358 = vmatpush.msra.mxu2 %v292_v40 }
  0xcc   : > { %387 = vmatpush.msra.mxu3 %v293_v41  ;;  %583 = vmatmul.msk.f32.vlgmr.msra.gmra.mxu2 %vm330_vm1, %v575_v42 }
  0xcd   : > { %587 = vmatmul.msk.f32.vlgmr.msra.gmra.mxu3 %vm330_vm1, %v575_v42 }
  0xd4   : > { %584 = vmatmul.msk.f32.gmra.mxu2 %vm330_vm1, %v576_v44 }
  0xd5   : > { %588 = vmatmul.msk.f32.gmra.mxu3 %vm330_vm1, %v576_v44 }
  0xdc   : > { %585 = vmatmul.msk.f32.gmra.mxu2 %vm330_vm1, %v577_v46 }
  0xdd   : > { %589 = vmatmul.msk.f32.gmra.mxu3 %vm330_vm1, %v577_v46 }
  0xe4   : > { %586 = vmatmul.msk.f32.gmra.mxu2 %vm330_vm1, %v578_v47 }
  0xe5   : > { %590 = vmatmul.msk.f32.gmra.mxu3 %vm330_vm1, %v578_v47 }
 0x14f   : > { %v360_v48 = vpop.f32.mrf.mxu2 }
 0x150   : > { %v389_v49 = vpop.f32.mrf.mxu3  ;;  %v361_v4 = vadd.f32 %v360_v48, %v313_v3 }
 0x151   : > { %v390_v5 = vadd.f32 %v389_v49, %v313_v3 }
 0x152   : > { %v401_v10 = vmax.f32 %v361_v4, 0.0 }
 0x153   : > { %v402_v11 = vmax.f32 %v390_v5, 0.0 }
 0x157   : > { %v363_v50 = vpop.f32.mrf.mxu2 }
 0x158   : > { %v392_v51 = vpop.f32.mrf.mxu3  ;;  %v364_v63 = vadd.f32 %v363_v50, %v318_v62 }
 0x159   : > { %v393_v0 = vadd.f32 %v392_v51, %v318_v62 }
 0x15a   : > { %v403_v8 = vmax.f32 %v364_v63, 0.0 }
 0x15b   : > { %v404_v9 = vmax.f32 %v393_v0, 0.0 }
 0x15f   : > { %v366_v53 = vpop.f32.mrf.mxu2 }
 0x160   : > { %v395_v54 = vpop.f32.mrf.mxu3  ;;  %v367_v58 = vadd.f32 %v366_v53, %v323_v55 }
 0x161   : > { %v396_v59 = vadd.f32 %v395_v54, %v323_v55 }
 0x162   : > { %v405_v6 = vmax.f32 %v367_v58, 0.0 }
 0x163   : > { %v406_v7 = vmax.f32 %v396_v59, 0.0 }
 0x167   : > { %v369_v56 = vpop.f32.mrf.mxu2 }
 0x168   : > { %v398_v57 = vpop.f32.mrf.mxu3  ;;  %v370_v60 = vadd.f32 %v369_v56, %v328_v52 }
 0x169   : > { %v399_v61 = vadd.f32 %v398_v57, %v328_v52 }
 0x16a   : > { %v407_v1 = vmax.f32 %v370_v60, 0.0 }
 0x16b   : > { %v408_v2 = vmax.f32 %v399_v61, 0.0 }
 0x16c   : > { %433 = vmatpush.msrb.mxu0 %v407_v1 }
 0x16d   : > { %453 = vmatpush.msrb.mxu1 %v408_v2 }
 0x16e   : > { %434 = vmatpush.msrb.mxu0 %v405_v6 }
 0x16f   : > { %454 = vmatpush.msrb.mxu1 %v406_v7 }
 0x170   : > { %435 = vmatpush.msrb.mxu0 %v403_v8 }
 0x171   : > { %455 = vmatpush.msrb.mxu1 %v404_v9 }
 0x172   : > { %436 = vmatpush.msrb.mxu0 %v401_v10 }
 0x173   : > { %456 = vmatpush.msrb.mxu1 %v402_v11  ;;  %593 = vmatmul.msk.f32.vlgmr.msrb.gmra.mxu0 %vm330_vm1, %v591_v12 }
 0x174   : > { %594 = vmatmul.msk.f32.vlgmr.msrb.gmra.mxu1 %vm330_vm1, %v591_v12 }
 0x1f0   : > { %v438_v15 = vpop.f32.mrf.mxu0 }
 0x1f1   : > { %v458_v16 = vpop.f32.mrf.mxu1  ;;  %v439_v18 = vadd.f32 %v438_v15, %v416_v13 }
 0x1f2   : > { %v459_v17 = vadd.f32 %v458_v16, %v416_v13 }
 0x1f4   : > { %v463_v19 = vrot.slane %v459_v17, 7 }
 0x1f6   : > { %v465_v20 = vsel %vm464_vm2, %v439_v18, %v463_v19 }
 0x1f7   : > { %471 = vst.msk [vmem:[%s188_s10] sm:$0x3] %vm469_vm3, %v465_v20 }
 0x1f8   : > { %707 = shalt.err (!%p704_p4)
}
 0x1f9   : > { %602 = dma.vmem_to_hbm [thread:$0]  (%p819_p11), %s486_s11, 32, %s488_s17, %s473_s16  }
 0x1fa PF: > { %s499_s26 = sand.u32 1, %s734_s12   ;;  %p978_p7 = scmp.ge.s32.totalorder %s746_s15, 2 }
 0x1fb   : > { %s500_s4 = scalar_lea.sflag [#allocation4], %s499_s26 }
 0x1fc   : > { %p609_p5 = pnand %p978_p7, %p823_p12 }
 0x1fe   : > { %p610_p8 = pneg %p609_p5 }
 0x200   : > { %729 = dma.done.wait (%p610_p8), %s500_s4, 32  }
 0x201   : > { %731 = vsyncadd (%p610_p8), %s500_s4, 4294967264  ;;  %p16_p10 = scmp.ge.s32.totalorder %s794_s18, 4   ;;  %s979_s12 = smov %s738_s13 }
 0x202   : > { %s980_s13 = smov %s742_s14  ;;  %s981_s14 = smov %s806_s21 }
 0x203   : > { %s982_s15 = smov %s794_s18  ;;  %18 = sbr.rel (!%p16_p10) target bundleno = 5 (0x5), region = 81 }
 0x208   :  { %506 = vsyncpa [#allocation3], 1 }
 0x209   :  { %508 = vsyncpa [#allocation3 + $0x1], 1 }
 0x20a   :  { %509 = vsyncpa [#allocation4], 1 }
 0x20b   :  { %511 = vsyncpa [#allocation4 + $0x1], 1 }

</bundles_post_ra>
